<compile_context>
chip_gen: v7x
topology: tpu7x:2x2x1
jax: 0.10.0
libtpu: 0.0.40
codegen_flags: <defaults>
</compile_context>

<pallas_src>
import functools

import jax
import jax.numpy as jnp
from jax.experimental import pallas as pl
from jax.experimental.pallas import tpu as pltpu


def _alignment_kernel(crit_ref, ehr_ref, w_crit_ref, w_ehr_ref, ba_ref, bm_ref,
                      out_ref, *, bs1, bs2, num_ec, mlp_dim):
    d1 = mlp_dim + 1  # fused columns: [0:mlp_dim] = mlp, [mlp_dim] = alignment score

    # Hoisted projections: exactly two MXU matmuls per call.
    crit_proj = jnp.dot(crit_ref[...], w_crit_ref[...],
                        preferred_element_type=jnp.float32)   # (bs1*num_ec, mlp_dim+1)
    ehr_proj = jnp.dot(ehr_ref[...], w_ehr_ref[...],
                       preferred_element_type=jnp.float32)    # (bs2, mlp_dim+1)

    # (bs1, 1, num_ec, mlp_dim+1): second-minor split on the 8-sublane boundary
    # (num_ec == 8 here), a layout no-op.
    # TODO(synk): for num_ec not a multiple of 8, build this from per-i row
    # slices (like ep4 below) instead of a reshape.
    cp4 = crit_proj.reshape(bs1, num_ec, d1)[:, None, :, :]
    # (1, bs2, 1, mlp_dim+1): per-j row slices concatenated along a new untiled
    # axis — avoids a sublane->untiled shape cast that Mosaic may not lower.
    ep4 = jnp.concatenate(
        [ehr_proj[j:j + 1, :][None] for j in range(bs2)], axis=0)[None]

    proj = cp4 + ep4                                          # (bs1, bs2, num_ec, mlp_dim+1)

    # Batched numerically-stable softmax over num_ec for all (i, j) at once.
    scores = proj[..., mlp_dim:] + ba_ref[0]                  # (bs1, bs2, num_ec, 1)
    m = jnp.max(scores, axis=2, keepdims=True)
    e = jnp.exp(scores - m)
    attn = e / jnp.sum(e, axis=2, keepdims=True)              # exact divide (review)

    # mlp(cat * attn) == attn * (cat @ Wm) + bm (bias is NOT scaled by attn);
    # the bm broadcast is emitted exactly once.
    h = attn * proj[..., :mlp_dim] + bm_ref[...]              # (bs1, bs2, num_ec, mlp_dim)

    out_ref[...] = h                                          # single whole-slab store


def fuse_alignment_params(params, query_dim):
    """One-time parameter preparation (hoisted out of the per-call path)."""
    mlp_dim = params["wm"].shape[1]
    return {
        # Split the concat-input Linears across the concat and fuse the 1-wide
        # alignment Linear as an extra output column of the mlp Linear:
        #   cat @ [Wm | Wa] == crit @ [Wm|Wa][:Q] + ehr @ [Wm|Wa][Q:]
        "w_crit": jnp.concatenate([params["wm"][:query_dim],
                                   params["wa"][:query_dim]], axis=1),
        "w_ehr": jnp.concatenate([params["wm"][query_dim:],
                                  params["wa"][query_dim:]], axis=1),
        "ba": params["ba"].reshape(1),             # (1,)  scalar bias -> SMEM
        "bm": params["bm"].reshape(1, mlp_dim),    # (1, mlp_dim)
    }


def alignment_forward(ehr_vector, criteria, ec_mask, fused):
    """Pallas equivalent of Alignment.forward. Returns (h, None, None)."""
    del ec_mask  # dead in the reference forward (ec_mask_extend is never used)
    bs1, num_ec, query_dim = criteria.shape
    bs2, _ = ehr_vector.shape
    mlp_dim = fused["bm"].shape[1]

    crit2d = criteria.reshape(bs1 * num_ec, query_dim)   # free HBM-side reshape

    kernel = functools.partial(_alignment_kernel, bs1=bs1, bs2=bs2,
                               num_ec=num_ec, mlp_dim=mlp_dim)
    vmem = pltpu.MemorySpace.VMEM
    h = pl.pallas_call(
        kernel,
        out_shape=jax.ShapeDtypeStruct((bs1, bs2, num_ec, mlp_dim), jnp.float32),
        in_specs=[
            pl.BlockSpec(memory_space=vmem),                    # criteria rows
            pl.BlockSpec(memory_space=vmem),                    # ehr rows
            pl.BlockSpec(memory_space=vmem),                    # fused crit weights
            pl.BlockSpec(memory_space=vmem),                    # fused ehr weights
            pl.BlockSpec(memory_space=pltpu.MemorySpace.SMEM),  # ba scalar
            pl.BlockSpec(memory_space=vmem),                    # bm
        ],
        out_specs=pl.BlockSpec(memory_space=vmem),
    )(crit2d, ehr_vector, fused["w_crit"], fused["w_ehr"], fused["ba"], fused["bm"])
    return h, None, None


def alignment_reference(ehr_vector, criteria, params):
    """Pure-JAX reference mirroring the PyTorch forward exactly."""
    bs1, num_ec, query_dim = criteria.shape
    bs2, mem_dim = ehr_vector.shape
    crit = jnp.broadcast_to(criteria[:, None], (bs1, bs2, num_ec, query_dim))
    ehr = jnp.broadcast_to(ehr_vector[None, :, None, :], (bs1, bs2, num_ec, mem_dim))
    cat = jnp.concatenate([crit, ehr], axis=-1)
    att = jnp.einsum("ijed,do->ijeo", cat, params["wa"],
                     precision=jax.lax.Precision.HIGHEST) + params["ba"]
    att = jax.nn.softmax(att[..., 0], axis=2)[..., None]
    h = jnp.einsum("ijed,dm->ijem", cat * att, params["wm"],
                   precision=jax.lax.Precision.HIGHEST) + params["bm"]
    return h


def init_params(key, mem_dim, conv_dim, mlp_dim):
    """Deterministic synthetic init matching the module's __init__ shapes."""
    query_dim = 4 * conv_dim
    d = mem_dim + query_dim
    k1, k2, k3, k4 = jax.random.split(key, 4)
    bound = 1.0 / jnp.sqrt(d)
    return {
        # alignment: Linear(mem_dim + 4*conv_dim, 1)  -> stored (in, out)
        "wa": jax.random.uniform(k1, (d, 1), jnp.float32, -bound, bound),
        "ba": jax.random.uniform(k2, (1,), jnp.float32, -bound, bound),
        # mlp: Linear(mem_dim + 4*conv_dim, mlp_dim)  -> stored (in, out)
        "wm": jax.random.uniform(k3, (d, mlp_dim), jnp.float32, -bound, bound),
        "bm": jax.random.uniform(k4, (mlp_dim,), jnp.float32, -bound, bound),
        # TODO(synk): word_trans and output Linear layers exist in __init__
        # but are never used in forward; omitted here.
    }


if __name__ == "__main__":
    key = jax.random.PRNGKey(0)
    k_ehr, k_crit, k_params = jax.random.split(key, 3)

    mem_dim, conv_dim, mlp_dim = 32, 8, 16
    query_dim = 4 * conv_dim
    bs1, bs2, num_ec = 2, 3, 8

    ehr_vector = jax.random.normal(k_ehr, (bs2, mem_dim), jnp.float32)
    criteria = jax.random.normal(k_crit, (bs1, num_ec, query_dim), jnp.float32)
    ec_mask = jnp.ones((bs1, num_ec), jnp.float32)   # unused by forward

    params = init_params(k_params, mem_dim, conv_dim, mlp_dim)
    fused = fuse_alignment_params(params, query_dim)   # one-time param prep

    fwd = jax.jit(alignment_forward)
    h, _, _ = fwd(ehr_vector, criteria, ec_mask, fused)
    h = jax.block_until_ready(h)

    h_ref = alignment_reference(ehr_vector, criteria, params)
    assert h.shape == (bs1, bs2, num_ec, mlp_dim)
    # Exact softmax divide -> tighter tolerance than the approx-reciprocal
    # version; residual diff is only f32 summation-order reassociation.
    assert jnp.allclose(h, h_ref, rtol=1e-3, atol=1e-4), "mismatch vs reference"

    print("KERNEL_OK")
</pallas_src>

<mosaic_0001>
module attributes {stable_mosaic.version = 11 : i64} {
  func.func @_alignment_kernel(%arg0: memref<16x32xf32, #tpu.memory_space<vmem>>, %arg1: memref<3x32xf32, #tpu.memory_space<vmem>>, %arg2: memref<32x17xf32, #tpu.memory_space<vmem>>, %arg3: memref<32x17xf32, #tpu.memory_space<vmem>>, %arg4: memref<1xf32, #tpu.memory_space<smem>>, %arg5: memref<1x16xf32, #tpu.memory_space<vmem>>, %arg6: memref<2x3x8x16xf32, #tpu.memory_space<vmem>>) attributes {dimension_semantics = [], scalar_prefetch = 0 : i64, scratch_operands = 0 : i64, tpu.core_type = #tpu.core_type<tc>} {
    %c0 = arith.constant 0 : index
    %c0_0 = arith.constant 0 : index
    %0 = vector.load %arg0[%c0, %c0_0] : memref<16x32xf32, #tpu.memory_space<vmem>>, vector<16x32xf32>
    %c0_1 = arith.constant 0 : index
    %c0_2 = arith.constant 0 : index
    %1 = vector.load %arg2[%c0_1, %c0_2] : memref<32x17xf32, #tpu.memory_space<vmem>>, vector<32x17xf32>
    %cst = arith.constant dense<0.000000e+00> : vector<16x17xf32>
    %2 = tpu.matmul %0, %1, %cst {dimension_numbers = #tpu.dot_dimension_numbers<[1], [0], [0], [1], [0, 0, 1, 1], [], []>} : vector<16x32xf32>, vector<32x17xf32>, vector<16x17xf32> -> vector<16x17xf32>
    %c0_3 = arith.constant 0 : index
    %c0_4 = arith.constant 0 : index
    %3 = vector.load %arg1[%c0_3, %c0_4] : memref<3x32xf32, #tpu.memory_space<vmem>>, vector<3x32xf32>
    %c0_5 = arith.constant 0 : index
    %c0_6 = arith.constant 0 : index
    %4 = vector.load %arg3[%c0_5, %c0_6] : memref<32x17xf32, #tpu.memory_space<vmem>>, vector<32x17xf32>
    %cst_7 = arith.constant dense<0.000000e+00> : vector<3x17xf32>
    %5 = tpu.matmul %3, %4, %cst_7 {dimension_numbers = #tpu.dot_dimension_numbers<[1], [0], [0], [1], [0, 0, 1, 1], [], []>} : vector<3x32xf32>, vector<32x17xf32>, vector<3x17xf32> -> vector<3x17xf32>
    %6 = vector.shape_cast %2 : vector<16x17xf32> to vector<2x8x17xf32>
    %7 = vector.shape_cast %6 : vector<2x8x17xf32> to vector<2x1x8x17xf32>
    %8 = vector.extract_strided_slice %5 {offsets = [0, 0], sizes = [1, 17], strides = [1, 1]} : vector<3x17xf32> to vector<1x17xf32>
    %9 = vector.shape_cast %8 : vector<1x17xf32> to vector<1x1x17xf32>
    %10 = vector.extract_strided_slice %5 {offsets = [1, 0], sizes = [1, 17], strides = [1, 1]} : vector<3x17xf32> to vector<1x17xf32>
    %11 = vector.shape_cast %10 : vector<1x17xf32> to vector<1x1x17xf32>
    %12 = vector.extract_strided_slice %5 {offsets = [2, 0], sizes = [1, 17], strides = [1, 1]} : vector<3x17xf32> to vector<1x17xf32>
    %13 = vector.shape_cast %12 : vector<1x17xf32> to vector<1x1x17xf32>
    %14 = tpu.concatenate %9, %11, %13 in 0 : vector<1x1x17xf32>, vector<1x1x17xf32>, vector<1x1x17xf32> -> vector<3x1x17xf32>
    %15 = vector.shape_cast %14 : vector<3x1x17xf32> to vector<1x3x1x17xf32>
    %16 = vector.broadcast %7 : vector<2x1x8x17xf32> to vector<2x3x8x17xf32>
    %17 = vector.broadcast %15 : vector<1x3x1x17xf32> to vector<2x3x8x17xf32>
    %18 = arith.addf %16, %17 : vector<2x3x8x17xf32>
    %19 = vector.extract_strided_slice %18 {offsets = [0, 0, 0, 16], sizes = [2, 3, 8, 1], strides = [1, 1, 1, 1]} : vector<2x3x8x17xf32> to vector<2x3x8x1xf32>
    %c0_8 = arith.constant 0 : index
    %20 = memref.load %arg4[%c0_8] : memref<1xf32, #tpu.memory_space<smem>>
    %21 = vector.broadcast %20 : f32 to vector<2x3x8x1xf32>
    %22 = arith.addf %19, %21 : vector<2x3x8x1xf32>
    %cst_9 = arith.constant dense<0xFF800000> : vector<2x3x1xf32>
    %23 = vector.multi_reduction <maximumf>, %22, %cst_9 [2] : vector<2x3x8x1xf32> to vector<2x3x1xf32>
    %24 = vector.shape_cast %23 : vector<2x3x1xf32> to vector<2x3x1x1xf32>
    %25 = vector.broadcast %24 : vector<2x3x1x1xf32> to vector<2x3x8x1xf32>
    %26 = arith.subf %22, %25 : vector<2x3x8x1xf32>
    %27 = math.exp %26 : vector<2x3x8x1xf32>
    %cst_10 = arith.constant dense<0.000000e+00> : vector<2x3x1xf32>
    %28 = vector.multi_reduction <add>, %27, %cst_10 [2] : vector<2x3x8x1xf32> to vector<2x3x1xf32>
    %29 = vector.shape_cast %28 : vector<2x3x1xf32> to vector<2x3x1x1xf32>
    %30 = vector.broadcast %29 : vector<2x3x1x1xf32> to vector<2x3x8x1xf32>
    %31 = arith.divf %27, %30 : vector<2x3x8x1xf32>
    %32 = vector.extract_strided_slice %18 {offsets = [0, 0, 0, 0], sizes = [2, 3, 8, 16], strides = [1, 1, 1, 1]} : vector<2x3x8x17xf32> to vector<2x3x8x16xf32>
    %33 = vector.broadcast %31 : vector<2x3x8x1xf32> to vector<2x3x8x16xf32>
    %34 = arith.mulf %33, %32 : vector<2x3x8x16xf32>
    %c0_11 = arith.constant 0 : index
    %c0_12 = arith.constant 0 : index
    %35 = vector.load %arg5[%c0_11, %c0_12] : memref<1x16xf32, #tpu.memory_space<vmem>>, vector<1x16xf32>
    %36 = vector.shape_cast %35 : vector<1x16xf32> to vector<1x1x1x16xf32>
    %37 = vector.broadcast %36 : vector<1x1x1x16xf32> to vector<2x3x8x16xf32>
    %38 = arith.addf %34, %37 : vector<2x3x8x16xf32>
    %c0_13 = arith.constant 0 : index
    %c0_14 = arith.constant 0 : index
    %c0_15 = arith.constant 0 : index
    %c0_16 = arith.constant 0 : index
    %39 = vector.load %arg6[%c0_13, %c0_14, %c0_15, %c0_16] : memref<2x3x8x16xf32, #tpu.memory_space<vmem>>, vector<2x3x8x16xf32>
    tpu.vector_store %arg6[%c0_13, %c0_14, %c0_15, %c0_16], %38 {strides = array<i32>} : memref<2x3x8x16xf32, #tpu.memory_space<vmem>>, vector<2x3x8x16xf32>,
    return
  }
}

</mosaic_0001>

<bundles_post_ra>
// kernel: alignment_forward.1
= control target key start
LH: loop header
LB: loop body
LE: loop exit
PB: predicated region body
PF: predicated region fallthrough
CT: control target
= control target key end

     0   :  { %v517_v3 = vmov 0.0|0.0   ;;  %vm518_vm0 = vmmov 0   ;;  %v519_v8 = vmov 0.0   ;;  %vm31_vm1 = vcmask 261120   ;;  %s659_s0 = inlined_call_operand.vmem [shape: f32[16,32], index: 0, kind: input, shape index: {}]   ;;  %s660_s1 = inlined_call_operand.vmem [shape: f32[3,32], index: 1, kind: input, shape index: {}]   ;;  %s661_s2 = inlined_call_operand.vmem [shape: f32[32,17], index: 2, kind: input, shape index: {}]   ;;  %s662_s3 = inlined_call_operand.vmem [shape: f32[32,17], index: 3, kind: input, shape index: {}]   ;;  %s663_s4 = inlined_call_operand.<no memory space> [shape: f32[1], index: 4, kind: input, shape index: {}]   ;;  %s664_s5 = inlined_call_operand.vmem [shape: f32[1,16], index: 5, kind: input, shape index: {}]   ;;  %s665_s6 = inlined_call_operand.hbm [shape: f32[2,3,8,16], index: 6, kind: output, shape index: {}]  }
   0x1   :  { %v27_v0 = vld [vmem:[%s661_s2] sm:$0xff]  ;;  %v28_v1 = vld [vmem:[%s661_s2 + $0x8] sm:$0xff]  ;;  %454 = vmatprep.subr.bf16.mxu1 %v517_v3  ;;  %v29_v6 = vld [vmem:[%s661_s2 + $0x10] sm:$0xff]  ;;  %443 = vmatprep.mubr.msk.f32.mxu1 %vm518_vm0, %v519_v8 }
   0x2   :  { %v114_v2 = vld [vmem:[%s662_s3] sm:$0xff]  ;;  %v446_v4 = vpack.c.bf16 %v28_v1, %v27_v0  ;;  %v115_v5 = vld [vmem:[%s662_s3 + $0x8] sm:$0xff]  ;;  %v30_v7 = vld [vmem:[%s661_s2 + $0x18] sm:$0xff] }
   0x3   :  { %v455_v9 = vpack.c.bf16 %v115_v5, %v114_v2  ;;  %v450_v10 = vpack.c.bf16 %v30_v7, %v29_v6  ;;  %v116_v11 = vld [vmem:[%s662_s3 + $0x10] sm:$0xff]  ;;  %v117_v12 = vld [vmem:[%s662_s3 + $0x18] sm:$0xff]  ;;  %v25_v13 = vld [vmem:[%s659_s0] sm:$0xff] }
   0x4   :  { %447 = vmatprep.subr.bf16.mxu0 %v446_v4  ;;  %432 = vmatprep.mubr.msk.f32.mxu0 %vm31_vm1, %v25_v13 }
   0x5   :  { %12 = vsyncpa [#allocation4], 0  ;;  %456 = vmatpush3.bf16.msra.mxu1 %v455_v9  ;;  %449 = vmatpush3.bf16.msra.mxu0 %v446_v4  ;;  %v458_v14 = vpack.c.bf16 %v117_v12, %v116_v11  ;;  %v113_v15 = vld [vmem:[%s660_s1] sm:$0x7]  ;;  %v26_v16 = vld [vmem:[%s659_s0 + $0x8] sm:$0xff]  ;;  %v520_v17 = vmov 16   ;;  %v196_v18 = vlaneseq  ;;  %v215_v28 = vstv %s663_s4 }
   0x6   :  { %457 = vmatprep.subr.bf16.mxu1 %v517_v3  ;;  %451 = vmatprep.subr.bf16.mxu0 %v450_v10  ;;  %vm222_vm2 = vcmask 138368   ;;  %vm386_vm3 = vcmask 130048  }
   0x7   :  { %468 = vset.pattern.permute.xlu1 %v520_v17  ;;  %467 = vset.pattern.permute.xlu0 %v520_v17  ;;  %v197_v19 = vshrl.u32 %v196_v18, 7 }
   0x9   :  { %459 = vmatpush3.bf16.msra.mxu1 %v458_v14  ;;  %453 = vmatpush3.bf16.msra.mxu0 %v450_v10  ;;  %v198_v20 = vsub.s32 0, %v197_v19 }
   0xc   :  { %444 = vmatmul.mubr.msk.f32.vlgmr.msra.gmra.mrb[0].mxu1 %vm31_vm1, %v113_v15  ;;  %433 = vmatmul.mubr.msk.f32.vlgmr.msra.gmra.mrb[0].mxu0 %vm31_vm1, %v26_v16 }
  0xdf   :  { %v187_v21 = vpop.f32.mrb[0].mxu1  ;;  %v434_v22 = vpop.f32.mrb[0].mxu0 }
  0xe0   :  { %v192_v23 = vrot.slane %v187_v21, 1  ;;  %v194_v24 = vrot.slane %v187_v21, 2  ;;  %v199_v25 = vrot.slane %v187_v21, %v198_v20  ;;  %v445_v26 = vpop.f32.mrb[1].mxu1  ;;  %v104_v27 = vpop.f32.mrb[1].mxu0 }
  0xe2   :  { %v203_v29 = vrot.slane %v192_v23, %v198_v20  ;;  %v207_v30 = vrot.slane %v194_v24, %v198_v20  ;;  %v598_v31 = vadd.f32 %v434_v22, %v199_v25  ;;  %v600_v32 = vadd.f32 %v199_v25, %v104_v27 }
  0xe4   :  { %v602_v33 = vadd.f32 %v434_v22, %v203_v29  ;;  %v604_v34 = vadd.f32 %v434_v22, %v207_v30  ;;  %v219_v35 = vadd.f32 %v215_v28, %v598_v31  ;;  %v607_v36 = vadd.f32 %v203_v29, %v104_v27 }
  0xe5   :  { %v609_v37 = vadd.f32 %v207_v30, %v104_v27  ;;  %v216_v38 = vadd.f32 %v215_v28, %v600_v32 }
  0xe6   :  { %v220_v39 = vadd.f32 %v215_v28, %v602_v33  ;;  %v221_v40 = vadd.f32 %v215_v28, %v604_v34  ;;  %v244_v41 = vsel %vm222_vm2, %v219_v35, -inf  ;;  %v217_v42 = vadd.f32 %v215_v28, %v607_v36 }
  0xe7   :  { %v245_v43 = vrot.slane %v244_v41, 4  ;;  %v218_v44 = vadd.f32 %v215_v28, %v609_v37  ;;  %v223_v45 = vsel %vm222_vm2, %v216_v38, -inf }
  0xe8   :  { %v251_v46 = vsel %vm222_vm2, %v220_v39, -inf  ;;  %v258_v47 = vsel %vm222_vm2, %v221_v40, -inf  ;;  %v224_v48 = vrot.slane %v223_v45, 4  ;;  %v230_v49 = vsel %vm222_vm2, %v217_v42, -inf }
  0xe9   :  { %v246_v50 = vmax.f32 %v244_v41, %v245_v43  ;;  %v252_v51 = vrot.slane %v251_v46, 4  ;;  %v259_v52 = vrot.slane %v258_v47, 4  ;;  %v231_v53 = vrot.slane %v230_v49, 4 }
  0xea   :  { %v225_v54 = vmax.f32 %v223_v45, %v224_v48  ;;  %v237_v55 = vsel %vm222_vm2, %v218_v44, -inf }
  0xeb   :  { %v247_v56 = vrot.slane %v246_v50, 2  ;;  %v253_v57 = vmax.f32 %v251_v46, %v252_v51  ;;  %v260_v58 = vmax.f32 %v258_v47, %v259_v52  ;;  %v232_v59 = vmax.f32 %v230_v49, %v231_v53 }
  0xec   :  { %v226_v60 = vrot.slane %v225_v54, 2  ;;  %v238_v61 = vrot.slane %v237_v55, 4 }
  0xed   :  { %v248_v62 = vmax.f32 %v246_v50, %v247_v56  ;;  %v254_v63 = vrot.slane %v253_v57, 2  ;;  %v261_v0 = vrot.slane %v260_v58, 2  ;;  %v233_v1 = vrot.slane %v232_v59, 2 }
  0xee   :  { %v227_v2 = vmax.f32 %v225_v54, %v226_v60  ;;  %v239_v3 = vmax.f32 %v237_v55, %v238_v61 }
  0xef   :  { %v249_v4 = vrot.slane %v248_v62, 1  ;;  %v255_v5 = vmax.f32 %v253_v57, %v254_v63  ;;  %v262_v6 = vmax.f32 %v260_v58, %v261_v0  ;;  %v234_v7 = vmax.f32 %v232_v59, %v233_v1 }
  0xf0   :  { %v228_v8 = vrot.slane %v227_v2, 1  ;;  %v240_v9 = vrot.slane %v239_v3, 2 }
  0xf1   :  { %v250_v10 = vmax.f32 %v248_v62, %v249_v4  ;;  %v256_v11 = vrot.slane %v255_v5, 1  ;;  %v263_v12 = vrot.slane %v262_v6, 1  ;;  %v235_v13 = vrot.slane %v234_v7, 1 }
  0xf2   :  { %v229_v14 = vmax.f32 %v227_v2, %v228_v8  ;;  %v241_v15 = vmax.f32 %v239_v3, %v240_v9 }
  0xf3   :  { %v257_v16 = vmax.f32 %v255_v5, %v256_v11  ;;  %v264_v17 = vmax.f32 %v262_v6, %v263_v12  ;;  %v268_v18 = vsub.f32 %v219_v35, %v250_v10  ;;  %v236_v19 = vmax.f32 %v234_v7, %v235_v13 }
  0xf4   :  { %v242_v20 = vrot.slane %v241_v15, 1  ;;  %v265_v21 = vsub.f32 %v216_v38, %v229_v14 }
  0xf5   :  { %v269_v22 = vsub.f32 %v220_v39, %v257_v16  ;;  %v270_v23 = vsub.f32 %v221_v40, %v264_v17  ;;  %v277_v24 = vmul.f32 1.442695, %v268_v18  ;;  %v266_v25 = vsub.f32 %v217_v42, %v236_v19 }
  0xf6   :  { %v243_v26 = vmax.f32 %v241_v15, %v242_v20  ;;  %v271_v27 = vmul.f32 1.442695, %v265_v21 }
  0xf7   :  { %469 = vpow2.f32 %v277_v24  ;;  %v279_v28 = vmul.f32 1.442695, %v269_v22  ;;  %v281_v29 = vmul.f32 1.442695, %v270_v23  ;;  %v273_v30 = vmul.f32 1.442695, %v266_v25 }
  0xf8   :  { %v267_v41 = vsub.f32 %v218_v44, %v243_v26  ;;  %471 = vpow2.f32 %v271_v27 }
  0xf9   :  { %473 = vpow2.f32 %v279_v28 }
  0xfa   :  { %475 = vpow2.f32 %v281_v29  ;;  %v275_v43 = vmul.f32 1.442695, %v267_v41 }
  0xfb   :  { %477 = vpow2.f32 %v273_v30 }
  0xfc   :  { %479 = vpow2.f32 %v275_v43 }
 0x101   :  { %v470_v35 = vpop.eup %469 }
 0x102   :  { %v472_v45 = vpop.eup %471  ;;  %v304_v38 = vsel %vm222_vm2, %v470_v35, 0.0 }
 0x103   :  { %v623_v39 = vpop.eup %473  ;;  %v283_v40 = vsel %vm222_vm2, %v472_v45, 0.0  ;;  %v305_v42 = vrot.slane %v304_v38, 4 }
 0x104   :  { %v476_v46 = vpop.eup %475  ;;  %v311_v47 = vsel %vm222_vm2, %v623_v39, 0.0  ;;  %v284_v44 = vrot.slane %v283_v40, 4 }
 0x105   :  { %v478_v48 = vpop.eup %477  ;;  %v312_v49 = vrot.slane %v311_v47, 4  ;;  %v318_v50 = vsel %vm222_vm2, %v476_v46, 0.0  ;;  %v306_v51 = vadd.f32 %v305_v42, %v304_v38 }
 0x106   :  { %v480_v52 = vpop.eup %479  ;;  %v319_v53 = vrot.slane %v318_v50, 4  ;;  %v290_v54 = vsel %vm222_vm2, %v478_v48, 0.0  ;;  %v285_v55 = vadd.f32 %v284_v44, %v283_v40 }
 0x107   :  { %v291_v56 = vrot.slane %v290_v54, 4  ;;  %v297_v57 = vsel %vm222_vm2, %v480_v52, 0.0  ;;  %v307_v58 = vrot.slane %v306_v51, 2  ;;  %v313_v59 = vadd.f32 %v312_v49, %v311_v47 }
 0x108   :  { %v298_v60 = vrot.slane %v297_v57, 4  ;;  %v286_v61 = vrot.slane %v285_v55, 2  ;;  %v320_v62 = vadd.f32 %v319_v53, %v318_v50 }
 0x109   :  { %v292_v63 = vadd.f32 %v291_v56, %v290_v54  ;;  %v308_v0 = vadd.f32 %v307_v58, %v306_v51  ;;  %v314_v1 = vrot.slane %v313_v59, 2 }
 0x10a   :  { %v299_v2 = vadd.f32 %v298_v60, %v297_v57  ;;  %v287_v3 = vadd.f32 %v286_v61, %v285_v55  ;;  %v321_v4 = vrot.slane %v320_v62, 2 }
 0x10b   :  { %v309_v5 = vrot.slane %v308_v0, 1  ;;  %v293_v6 = vrot.slane %v292_v63, 2  ;;  %v315_v7 = vadd.f32 %v314_v1, %v313_v59 }
 0x10c   :  { %v288_v8 = vrot.slane %v287_v3, 1  ;;  %v300_v9 = vrot.slane %v299_v2, 2  ;;  %v322_v10 = vadd.f32 %v321_v4, %v320_v62 }
 0x10d   :  { %v310_v11 = vadd.f32 %v309_v5, %v308_v0  ;;  %v294_v12 = vadd.f32 %v293_v6, %v292_v63  ;;  %v316_v13 = vrot.slane %v315_v7, 1 }
 0x10e   :  { %v289_v14 = vadd.f32 %v288_v8, %v287_v3  ;;  %v301_v15 = vadd.f32 %v300_v9, %v299_v2  ;;  %v323_v16 = vrot.slane %v322_v10, 1 }
 0x10f   :  { %481 = vrcp.f32 %v310_v11  ;;  %v295_v17 = vrot.slane %v294_v12, 1  ;;  %v317_v20 = vadd.f32 %v316_v13, %v315_v7 }
 0x110   :  { %483 = vrcp.f32 %v289_v14  ;;  %v302_v18 = vrot.slane %v301_v15, 1  ;;  %v324_v22 = vadd.f32 %v323_v16, %v322_v10 }
 0x111   :  { %v296_v19 = vadd.f32 %v295_v17, %v294_v12 }
 0x112   :  { %v303_v21 = vadd.f32 %v302_v18, %v301_v15 }
 0x113   :  { %485 = vrcp.f32 %v296_v19 }
 0x114   :  { %487 = vrcp.f32 %v303_v21 }
 0x115   :  { %489 = vrcp.f32 %v317_v20 }
 0x116   :  { %491 = vrcp.f32 %v324_v22 }
 0x119   :  { %v482_v23 = vpop.eup %481 }
 0x11a   :  { %v484_v24 = vpop.eup %483  ;;  %v332_v25 = vmul.f32 %v482_v23, %v470_v35  ;;  %v412_v35 = vld [vmem:[%s664_s5] ss:$0 sm:$0xff]  ;;  %s521_s5 = smov [#allocation3]  }
 0x11b   :  { %v326_v26 = vmul.f32 %v484_v24, %v472_v45  ;;  %s398_s18 = sshll.u32 %s521_s5, 4  ;;  %s399_s18 = int_to_ptr.vmem [resolvable:$true] %s398_s18 }
 0x11c   :  { %354 = vperm.xlu1 %468, %v332_v25   ;;  %s493_s19 = scalar_lea.vmem %s399_s18, 768  ;;  %p498_p1 = scmp.lt.s32.totalorder %s399_s18, %s399_s18 }
 0x11d   :  { %v486_v27 = vpop.eup %485  ;;  %339 = vperm.xlu0 %467, %v326_v26   ;;  %p494_p0 = scmp.ne.s32.totalorder %s399_s18, %s493_s19  ;;  %p499_p2 = scmp.lt.s32.totalorder %s493_s19, %s493_s19 }
 0x11e   :  { %v488_v28 = vpop.eup %487  ;;  %v328_v41 = vmul.f32 %v486_v27, %v478_v48 }
 0x11f   :  { %v490_v29 = vpop.eup %489  ;;  %v330_v30 = vmul.f32 %v488_v28, %v480_v52  ;;  %p500_p3 = por %p499_p2, %p498_p1 }
 0x120   :  { %v492_v43 = vpop.eup %491  ;;  %v334_v40 = vmul.f32 %v490_v29, %v623_v39 }
 0x121   :  { %349 = vperm.xlu1 %468, %v330_v30   ;;  %344 = vperm.xlu0 %467, %v328_v41   ;;  %v336_v38 = vmul.f32 %v492_v43, %v476_v46  ;;  %p501_p4 = pnand %p500_p3, %p494_p0 }
 0x125   :  { %364 = vperm.xlu1 %468, %v336_v38   ;;  %359 = vperm.xlu0 %467, %v334_v40  }
 0x19b   :  { %v355_v45 = vpop.permute.xlu1 %354 }
 0x19c   :  { %v370_v42 = vmul.f32 %v355_v45, %v598_v31  ;;  %v340_v47 = vpop.permute.xlu0 %339 }
 0x19d   :  { %v367_v44 = vmul.f32 %v340_v47, %v600_v32 }
 0x19e   :  { %v383_v48 = vadd.f32 %v412_v35, %v370_v42 }
 0x19f   :  { %v380_v49 = vadd.f32 %v412_v35, %v367_v44 }
 0x1a0   :  { %390 = vst.msk [vmem:[#allocation3 + $0x18] sm:$0xff] %vm386_vm3, %v383_v48  ;;  %v350_v46 = vpop.permute.xlu1 %349  ;;  %v345_v50 = vpop.permute.xlu0 %344 }
 0x1a1   :  { %387 = vst.msk [vmem:[#allocation3] sm:$0xff] %vm386_vm3, %v380_v49  ;;  %v369_v39 = vmul.f32 %v350_v46, %v609_v37  ;;  %v368_v51 = vmul.f32 %v345_v50, %v607_v36 }
 0x1a3   :  { %v382_v52 = vadd.f32 %v412_v35, %v369_v39  ;;  %v381_v53 = vadd.f32 %v412_v35, %v368_v51 }
 0x1a4   :  { %v365_v54 = vpop.permute.xlu1 %364  ;;  %v360_v31 = vpop.permute.xlu0 %359 }
 0x1a5   :  { %389 = vst.msk [vmem:[#allocation3 + $0x10] sm:$0xff] %vm386_vm3, %v382_v52  ;;  %388 = vst.msk [vmem:[#allocation3 + $0x8] sm:$0xff] %vm386_vm3, %v381_v53  ;;  %v372_v32 = vmul.f32 %v365_v54, %v604_v34  ;;  %v371_v55 = vmul.f32 %v360_v31, %v602_v33 }
 0x1a7   :  { %v385_v56 = vadd.f32 %v412_v35, %v372_v32  ;;  %v384_v57 = vadd.f32 %v412_v35, %v371_v55 }
 0x1a9   :  { %392 = vst.msk [vmem:[#allocation3 + $0x28] sm:$0xff] %vm386_vm3, %v385_v56  ;;  %391 = vst.msk [vmem:[#allocation3 + $0x20] sm:$0xff] %vm386_vm3, %v384_v57 }
 0x1aa   :  { %504 = shalt.err (!%p501_p4)
}
 0x1ab   :  { %s505_s22 = scalar_lea.hbm %s665_s6, 768 }
 0x1ac   :  { %p506_p5 = scmp.ne.s32.totalorder %s665_s6, %s505_s22  ;;  %p509_p6 = scmp.lt.u32.totalorder %s505_s22, %s665_s6 }
 0x1ae   :  { %p511_p7 = pnand %p509_p6, %p506_p5 }
 0x1b0   :  { %514 = shalt.err (!%p511_p7)
}
 0x1b1   :  { %s522_s27 = smov 128   ;;  %s523_s28 = smov 8  }
 0x1b2   :  { %404 = dma.vmem_to_hbm [thread:$0]  %s399_s18, 768, %s665_s6, [#allocation4], %s522_s27, %s522_s27, %s523_s28  }
 0x1b3   :  { %515 = dma.done.wait [#allocation4], 768  }
 0x1b4   :  { %516 = vsyncadd [#allocation4], 4294966528 }
 0x1b5   :  { %408 = vsyncpa [#allocation4], 1 }

</bundles_post_ra>
